<compile_context>
chip_gen: v7x
topology: tpu7x:2x2x1
jax: 0.10.0
libtpu: 0.0.40
codegen_flags: <defaults>
</compile_context>

<pallas_src>
import jax
import jax.numpy as jnp
from jax.experimental import pallas as pl
from jax.experimental.pallas import tpu as pltpu


def _downsample_kernel(x_ref, o1, o2, o3, o4, o5):
    refs = (x_ref, o1, o2, o3, o4, o5)
    # Cascade: stage k is an exact 2x nearest downsample of stage k-1
    # (source index = 2 * dest index per stage => x[dst * 2**k] overall).
    for k in range(1, 6):
        src = refs[k - 1]
        dst = refs[k]
        m_out, w_out = dst.shape          # (TB*Hk, Wk)
        _, w_in = src.shape               # (TB*H_{k-1}, W_{k-1})
        # Row selection: per-image even rows == stride-2 rows of the flattened
        # (TB*H_{k-1}) sublane axis (every per-image height here is even).
        rows = src[pl.ds(0, m_out, 2), :]                       # (TB*Hk, W_{k-1})
        # Column selection: exact one-hot matmul on the MXU; the selection
        # matrix is generated in-kernel (no HBM reads, no double-buffered
        # VMEM reservations for constant operands).
        r_ids = jax.lax.broadcasted_iota(jnp.int32, (w_in, w_out), 0)
        c_ids = jax.lax.broadcasted_iota(jnp.int32, (w_in, w_out), 1)
        sw = (r_ids == 2 * c_ids).astype(rows.dtype)            # (W_{k-1}, Wk)
        y = jnp.dot(rows, sw, preferred_element_type=jnp.float32)
        dst[...] = y.astype(dst.dtype)


def _pick_batch_tile(B, H, W, itemsize, budget_bytes=8 << 20):
    """Largest divisor of B whose block (input + cascade outputs, 2x buffered)
    fits a conservative VMEM budget (safe for v7x's smaller VMEM)."""
    per_img = int(2 * itemsize * H * W * (1.0 + 1.0 / 3.0)) + 1
    tb = max(1, min(B, budget_bytes // per_img))
    # tb must divide B; unless tb == B, keep every output block's sublane dim
    # (tb * H / 2**k) a multiple of 8  =>  tb * H % 256 == 0.
    while tb > 0 and (B % tb or (tb != B and (tb * H) % 256)):
        tb -= 1
    return int(tb) if tb > 0 else B


def net_forward(x):
    """Pallas equivalent of Net.forward: returns (x, down_1, ..., down_5)."""
    N, C, H, W = x.shape
    assert H % 32 == 0 and W % 32 == 0, "H and W must be divisible by 2**5"
    B = N * C
    dtype = x.dtype
    itemsize = jnp.dtype(dtype).itemsize
    xf = x.reshape(B * H, W)              # flattened rows; lane axis = W

    TB = _pick_batch_tile(B, H, W, itemsize)
    grid = (B // TB,)

    in_specs = [pl.BlockSpec((TB * H, W), lambda b: (b, 0))]
    out_shapes = []
    out_specs = []
    for k in range(1, 6):
        Hk, Wk = H >> k, W >> k
        out_shapes.append(jax.ShapeDtypeStruct((B * Hk, Wk), dtype))
        out_specs.append(pl.BlockSpec((TB * Hk, Wk), lambda b: (b, 0)))

    # HBM-bandwidth-bound op: read x once, write ~x/3 of downsampled outputs.
    out_elems = sum((B * H * W) >> (2 * k) for k in range(1, 6))
    cost = pl.CostEstimate(
        flops=sum(2 * (B * (H >> k)) * (W >> (k - 1)) * (W >> k)
                  for k in range(1, 6)),
        transcendentals=0,
        bytes_accessed=itemsize * (B * H * W + out_elems),
    )

    outs = pl.pallas_call(
        _downsample_kernel,
        out_shape=tuple(out_shapes),
        grid_spec=pltpu.PrefetchScalarGridSpec(
            num_scalar_prefetch=0,
            grid=grid,
            in_specs=in_specs,
            out_specs=tuple(out_specs),
        ),
        compiler_params=pltpu.CompilerParams(
            dimension_semantics=("parallel",)),   # disjoint output blocks
        cost_estimate=cost,
    )(xf)

    results = [x]                         # identity output: no copy at all
    for k, o in enumerate(outs, start=1):
        results.append(o.reshape(N, C, H >> k, W >> k))
    return tuple(results)


def _reference(x):
    # pure-JAX reference: nearest downsample with exact power-of-two scales
    outs = [x]
    for k in range(1, 6):
        s = 2 ** k
        outs.append(x[:, :, ::s, ::s])
    return tuple(outs)


if __name__ == "__main__":
    key = jax.random.PRNGKey(0)
    x = jax.random.normal(key, (2, 4, 32, 32), dtype=jnp.float32)

    outs = net_forward(x)
    outs = jax.block_until_ready(outs)

    refs = _reference(x)
    for o, r in zip(outs, refs):
        assert o.shape == r.shape, (o.shape, r.shape)
        assert o.dtype == r.dtype, (o.dtype, r.dtype)
        assert jnp.array_equal(o, r), "mismatch vs reference"

    print("KERNEL_OK")
</pallas_src>

<mosaic_0001>
module attributes {stable_mosaic.version = 11 : i64} {
  func.func @_downsample_kernel(%arg0: i32, %arg1: memref<256x32xf32, #tpu.memory_space<vmem>>, %arg2: memref<128x16xf32, #tpu.memory_space<vmem>>, %arg3: memref<64x8xf32, #tpu.memory_space<vmem>>, %arg4: memref<32x4xf32, #tpu.memory_space<vmem>>, %arg5: memref<16x2xf32, #tpu.memory_space<vmem>>, %arg6: memref<8x1xf32, #tpu.memory_space<vmem>>) attributes {dimension_semantics = [#tpu.dimension_semantics<parallel>], iteration_bounds = array<i64: 1>, scalar_prefetch = 0 : i64, scratch_operands = 0 : i64, tpu.core_type = #tpu.core_type<tc>, window_params = [{transform_indices = @transform_0, window_bounds = array<i64: 256, 32>}, {transform_indices = @transform_1, window_bounds = array<i64: 128, 16>}, {transform_indices = @transform_2, window_bounds = array<i64: 64, 8>}, {transform_indices = @transform_3, window_bounds = array<i64: 32, 4>}, {transform_indices = @transform_4, window_bounds = array<i64: 16, 2>}, {transform_indices = @transform_5, window_bounds = array<i64: 8, 1>}]} {
    %c0 = arith.constant 0 : index
    %c0_0 = arith.constant 0 : index
    %0 = tpu.strided_load %arg1[%c0, %c0_0] {strides = array<i32: 2, 1>} : memref<256x32xf32, #tpu.memory_space<vmem>>, vector<128x32xf32>
    %1 = tpu.iota {dimensions = array<i32: 0>} : vector<32x16xi32>
    %2 = tpu.iota {dimensions = array<i32: 1>} : vector<32x16xi32>
    %c2_i32 = arith.constant 2 : i32
    %3 = vector.broadcast %c2_i32 : i32 to vector<32x16xi32>
    %4 = arith.muli %3, %2 : vector<32x16xi32>
    %5 = arith.cmpi eq, %1, %4 : vector<32x16xi32>
    %6 = arith.extui %5 : vector<32x16xi1> to vector<32x16xi32>
    %7 = arith.sitofp %6 : vector<32x16xi32> to vector<32x16xf32>
    %cst = arith.constant dense<0.000000e+00> : vector<128x16xf32>
    %8 = tpu.matmul %0, %7, %cst {dimension_numbers = #tpu.dot_dimension_numbers<[1], [0], [0], [1], [0, 0, 1, 1], [], []>} : vector<128x32xf32>, vector<32x16xf32>, vector<128x16xf32> -> vector<128x16xf32>
    %c0_1 = arith.constant 0 : index
    %c0_2 = arith.constant 0 : index
    %9 = vector.load %arg2[%c0_1, %c0_2] : memref<128x16xf32, #tpu.memory_space<vmem>>, vector<128x16xf32>
    tpu.vector_store %arg2[%c0_1, %c0_2], %8 {strides = array<i32>} : memref<128x16xf32, #tpu.memory_space<vmem>>, vector<128x16xf32>,
    %c0_3 = arith.constant 0 : index
    %c0_4 = arith.constant 0 : index
    %10 = tpu.strided_load %arg2[%c0_3, %c0_4] {strides = array<i32: 2, 1>} : memref<128x16xf32, #tpu.memory_space<vmem>>, vector<64x16xf32>
    %11 = tpu.iota {dimensions = array<i32: 0>} : vector<16x8xi32>
    %12 = tpu.iota {dimensions = array<i32: 1>} : vector<16x8xi32>
    %c2_i32_5 = arith.constant 2 : i32
    %13 = vector.broadcast %c2_i32_5 : i32 to vector<16x8xi32>
    %14 = arith.muli %13, %12 : vector<16x8xi32>
    %15 = arith.cmpi eq, %11, %14 : vector<16x8xi32>
    %16 = arith.extui %15 : vector<16x8xi1> to vector<16x8xi32>
    %17 = arith.sitofp %16 : vector<16x8xi32> to vector<16x8xf32>
    %cst_6 = arith.constant dense<0.000000e+00> : vector<64x8xf32>
    %18 = tpu.matmul %10, %17, %cst_6 {dimension_numbers = #tpu.dot_dimension_numbers<[1], [0], [0], [1], [0, 0, 1, 1], [], []>} : vector<64x16xf32>, vector<16x8xf32>, vector<64x8xf32> -> vector<64x8xf32>
    %c0_7 = arith.constant 0 : index
    %c0_8 = arith.constant 0 : index
    %19 = vector.load %arg3[%c0_7, %c0_8] : memref<64x8xf32, #tpu.memory_space<vmem>>, vector<64x8xf32>
    tpu.vector_store %arg3[%c0_7, %c0_8], %18 {strides = array<i32>} : memref<64x8xf32, #tpu.memory_space<vmem>>, vector<64x8xf32>,
    %c0_9 = arith.constant 0 : index
    %c0_10 = arith.constant 0 : index
    %20 = tpu.strided_load %arg3[%c0_9, %c0_10] {strides = array<i32: 2, 1>} : memref<64x8xf32, #tpu.memory_space<vmem>>, vector<32x8xf32>
    %21 = tpu.iota {dimensions = array<i32: 0>} : vector<8x4xi32>
    %22 = tpu.iota {dimensions = array<i32: 1>} : vector<8x4xi32>
    %c2_i32_11 = arith.constant 2 : i32
    %23 = vector.broadcast %c2_i32_11 : i32 to vector<8x4xi32>
    %24 = arith.muli %23, %22 : vector<8x4xi32>
    %25 = arith.cmpi eq, %21, %24 : vector<8x4xi32>
    %26 = arith.extui %25 : vector<8x4xi1> to vector<8x4xi32>
    %27 = arith.sitofp %26 : vector<8x4xi32> to vector<8x4xf32>
    %cst_12 = arith.constant dense<0.000000e+00> : vector<32x4xf32>
    %28 = tpu.matmul %20, %27, %cst_12 {dimension_numbers = #tpu.dot_dimension_numbers<[1], [0], [0], [1], [0, 0, 1, 1], [], []>} : vector<32x8xf32>, vector<8x4xf32>, vector<32x4xf32> -> vector<32x4xf32>
    %c0_13 = arith.constant 0 : index
    %c0_14 = arith.constant 0 : index
    %29 = vector.load %arg4[%c0_13, %c0_14] : memref<32x4xf32, #tpu.memory_space<vmem>>, vector<32x4xf32>
    tpu.vector_store %arg4[%c0_13, %c0_14], %28 {strides = array<i32>} : memref<32x4xf32, #tpu.memory_space<vmem>>, vector<32x4xf32>,
    %c0_15 = arith.constant 0 : index
    %c0_16 = arith.constant 0 : index
    %30 = tpu.strided_load %arg4[%c0_15, %c0_16] {strides = array<i32: 2, 1>} : memref<32x4xf32, #tpu.memory_space<vmem>>, vector<16x4xf32>
    %31 = tpu.iota {dimensions = array<i32: 0>} : vector<4x2xi32>
    %32 = tpu.iota {dimensions = array<i32: 1>} : vector<4x2xi32>
    %c2_i32_17 = arith.constant 2 : i32
    %33 = vector.broadcast %c2_i32_17 : i32 to vector<4x2xi32>
    %34 = arith.muli %33, %32 : vector<4x2xi32>
    %35 = arith.cmpi eq, %31, %34 : vector<4x2xi32>
    %36 = arith.extui %35 : vector<4x2xi1> to vector<4x2xi32>
    %37 = arith.sitofp %36 : vector<4x2xi32> to vector<4x2xf32>
    %cst_18 = arith.constant dense<0.000000e+00> : vector<16x2xf32>
    %38 = tpu.matmul %30, %37, %cst_18 {dimension_numbers = #tpu.dot_dimension_numbers<[1], [0], [0], [1], [0, 0, 1, 1], [], []>} : vector<16x4xf32>, vector<4x2xf32>, vector<16x2xf32> -> vector<16x2xf32>
    %c0_19 = arith.constant 0 : index
    %c0_20 = arith.constant 0 : index
    %39 = vector.load %arg5[%c0_19, %c0_20] : memref<16x2xf32, #tpu.memory_space<vmem>>, vector<16x2xf32>
    tpu.vector_store %arg5[%c0_19, %c0_20], %38 {strides = array<i32>} : memref<16x2xf32, #tpu.memory_space<vmem>>, vector<16x2xf32>,
    %c0_21 = arith.constant 0 : index
    %c0_22 = arith.constant 0 : index
    %40 = tpu.strided_load %arg5[%c0_21, %c0_22] {strides = array<i32: 2, 1>} : memref<16x2xf32, #tpu.memory_space<vmem>>, vector<8x2xf32>
    %41 = tpu.iota {dimensions = array<i32: 0>} : vector<2x1xi32>
    %42 = tpu.iota {dimensions = array<i32: 1>} : vector<2x1xi32>
    %c2_i32_23 = arith.constant 2 : i32
    %43 = vector.broadcast %c2_i32_23 : i32 to vector<2x1xi32>
    %44 = arith.muli %43, %42 : vector<2x1xi32>
    %45 = arith.cmpi eq, %41, %44 : vector<2x1xi32>
    %46 = arith.extui %45 : vector<2x1xi1> to vector<2x1xi32>
    %47 = arith.sitofp %46 : vector<2x1xi32> to vector<2x1xf32>
    %cst_24 = arith.constant dense<0.000000e+00> : vector<8x1xf32>
    %48 = tpu.matmul %40, %47, %cst_24 {dimension_numbers = #tpu.dot_dimension_numbers<[1], [0], [0], [1], [0, 0, 1, 1], [], []>} : vector<8x2xf32>, vector<2x1xf32>, vector<8x1xf32> -> vector<8x1xf32>
    %c0_25 = arith.constant 0 : index
    %c0_26 = arith.constant 0 : index
    %49 = vector.load %arg6[%c0_25, %c0_26] : memref<8x1xf32, #tpu.memory_space<vmem>>, vector<8x1xf32>
    tpu.vector_store %arg6[%c0_25, %c0_26], %48 {strides = array<i32>} : memref<8x1xf32, #tpu.memory_space<vmem>>, vector<8x1xf32>,
    return
  }
  func.func @transform_0(%arg0: i32) -> (i32, i32) {
    %c0_i32 = arith.constant 0 : i32
    %c0_i32_0 = arith.constant 0 : i32
    return %arg0, %c0_i32 : i32, i32
  }
  func.func @transform_1(%arg0: i32) -> (i32, i32) {
    %c0_i32 = arith.constant 0 : i32
    %c0_i32_0 = arith.constant 0 : i32
    return %arg0, %c0_i32 : i32, i32
  }
  func.func @transform_2(%arg0: i32) -> (i32, i32) {
    %c0_i32 = arith.constant 0 : i32
    %c0_i32_0 = arith.constant 0 : i32
    return %arg0, %c0_i32 : i32, i32
  }
  func.func @transform_3(%arg0: i32) -> (i32, i32) {
    %c0_i32 = arith.constant 0 : i32
    %c0_i32_0 = arith.constant 0 : i32
    return %arg0, %c0_i32 : i32, i32
  }
  func.func @transform_4(%arg0: i32) -> (i32, i32) {
    %c0_i32 = arith.constant 0 : i32
    %c0_i32_0 = arith.constant 0 : i32
    return %arg0, %c0_i32 : i32, i32
  }
  func.func @transform_5(%arg0: i32) -> (i32, i32) {
    %c0_i32 = arith.constant 0 : i32
    %c0_i32_0 = arith.constant 0 : i32
    return %arg0, %c0_i32 : i32, i32
  }
}

</mosaic_0001>

<bundles_post_ra>
// kernel: tpu_custom_call.1
= control target key start
LH: loop header
LB: loop body
LE: loop exit
PB: predicated region body
PF: predicated region fallthrough
CT: control target
= control target key end

     0   :  { %v44_v0 = vlaneseq  ;;  %vm64_vm0 = vcmask 261120   ;;  %v919_v8 = vmov 1.0|1.0   ;;  %vm258_vm7 = vcmask 130048   ;;  %s1215_s0 = inlined_call_operand.vmem [shape: f32[256,32], index: 0, kind: input, shape index: {}]   ;;  %s1216_s1 = inlined_call_operand.vmem [shape: f32[128,16], index: 1, kind: output, shape index: {0}]   ;;  %s1217_s2 = inlined_call_operand.vmem [shape: f32[64,8], index: 2, kind: output, shape index: {1}]   ;;  %s1218_s3 = inlined_call_operand.vmem [shape: f32[32,4], index: 3, kind: output, shape index: {2}]   ;;  %s1219_s4 = inlined_call_operand.vmem [shape: f32[16,2], index: 4, kind: output, shape index: {3}]   ;;  %s1220_s5 = inlined_call_operand.vmem [shape: f32[8,1], index: 5, kind: output, shape index: {4}]  }
   0x1   :  { %v13_v1 = vld [vmem:[%s1215_s0] ss:$2 sm:$0xff]  ;;  %v727_v9 = vld [vmem:[%s1215_s0 + $0x10] ss:$2 sm:$0xff]  ;;  %v920_v48 = vmov 1.0   ;;  %vm419_vm8 = vcmask 64512  }
   0x2   :  { %v956_v2 = vshrl.u32 %v44_v0, 7  ;;  %v50_v3 = vand.u32 127, %v44_v0  ;;  %845 = vmatprep.mubr.msk.f32.mxu0 %vm64_vm0, %v13_v1  ;;  %v728_v10 = vld [vmem:[%s1215_s0 + $0x20] ss:$2 sm:$0xff]  ;;  %v729_v11 = vld [vmem:[%s1215_s0 + $0x30] ss:$2 sm:$0xff] }
   0x3   :  { %v730_v12 = vld [vmem:[%s1215_s0 + $0x40] ss:$2 sm:$0xff]  ;;  %v731_v13 = vld [vmem:[%s1215_s0 + $0x50] ss:$2 sm:$0xff]  ;;  %vm546_vm9 = vcmask 1043456   ;;  %v921_v61 = vmov 0.0  }
   0x4   :  { %v46_v4 = vadd.s32 8, %v956_v2  ;;  %v960_v5 = vmul.u32 2, %v50_v3  ;;  %v47_v6 = vadd.s32 16, %v956_v2  ;;  %v48_v7 = vadd.s32 24, %v956_v2  ;;  %v732_v14 = vld [vmem:[%s1215_s0 + $0x60] ss:$2 sm:$0xff] }
   0x5   :  { %v733_v15 = vld [vmem:[%s1215_s0 + $0x70] ss:$2 sm:$0xff]  ;;  %v734_v16 = vld [vmem:[%s1215_s0 + $0x80] ss:$2 sm:$0xff]  ;;  %vm532_vm10 = vcmask 31744   ;;  %vm632_vm11 = vcmask 1041408  }
   0x6   :  { %vm52_vm1 = vcmp.eq.s32.totalorder %v956_v2, %v960_v5  ;;  %vm53_vm2 = vcmp.eq.s32.totalorder %v46_v4, %v960_v5  ;;  %vm54_vm3 = vcmp.eq.s32.totalorder %v47_v6, %v960_v5  ;;  %vm55_vm4 = vcmp.eq.s32.totalorder %v48_v7, %v960_v5  ;;  %v735_v17 = vld [vmem:[%s1215_s0 + $0x90] ss:$2 sm:$0xff]  ;;  %v736_v18 = vld [vmem:[%s1215_s0 + $0xa0] ss:$2 sm:$0xff] }
   0x7   :  { %vm903_vm5 = vmpackc.low %vm53_vm2, %vm52_vm1  ;;  %v737_v19 = vld [vmem:[%s1215_s0 + $0xb0] ss:$2 sm:$0xff]  ;;  %v738_v20 = vld [vmem:[%s1215_s0 + $0xc0] ss:$2 sm:$0xff]  ;;  %v742_v62 = vsel %vm52_vm1, 1.0, %v921_v61  ;;  %vm922_vm12 = vmmov 0  }
   0x8   :  { %904 = vmatprep.subr.msk.bf16.mxu0 %vm903_vm5, %v919_v8  ;;  %vm907_vm6 = vmpackc.low %vm55_vm4, %vm54_vm3  ;;  %912 = vmatprep.subr.msk.bf16.mxu1 %vm903_vm5, %v919_v8  ;;  %v739_v21 = vld [vmem:[%s1215_s0 + $0xd0] ss:$2 sm:$0xff]  ;;  %v740_v22 = vld [vmem:[%s1215_s0 + $0xe0] ss:$2 sm:$0xff]  ;;  %vm625_vm13 = vcmask 15360   ;;  %vm705_vm14 = vcmask 7168  }
   0x9   :  { %906 = vmatpush3.bf16.msk.msra.mxu0 %vm903_vm5, %v919_v8  ;;  %914 = vmatpush3.bf16.msk.msra.mxu1 %vm903_vm5, %v919_v8  ;;  %v741_v23 = vld [vmem:[%s1215_s0 + $0xf0] ss:$2 sm:$0xff] }
   0xa   :  { %908 = vmatprep.subr.msk.bf16.mxu0 %vm907_vm6, %v919_v8  ;;  %885 = vmatprep.subr.msk.mxu1 %vm52_vm1, %v920_v48 }
   0xd   :  { %910 = vmatpush3.bf16.msk.msra.mxu0 %vm907_vm6, %v919_v8 }
  0x10   :  { %846 = vmatmul.mubr.msk.f32.vlgmr.msra.gmra.mrb[0].mxu0 %vm64_vm0, %v727_v9 }
  0x11   :  { %848 = vmatprep.mubr.msk.f32.mxu0 %vm64_vm0, %v728_v10 }
  0x14   :  { %849 = vmatmul.mubr.msk.f32.gmra.mrb[2].mxu0 %vm64_vm0, %v729_v11 }
  0x15   :  { %851 = vmatprep.mubr.msk.f32.mxu0 %vm64_vm0, %v730_v12 }
  0x18   :  { %852 = vmatmul.mubr.msk.f32.gmra.mrb[4].mxu0 %vm64_vm0, %v731_v13 }
  0x19   :  { %854 = vmatprep.mubr.msk.f32.mxu0 %vm64_vm0, %v732_v14 }
  0x1c   :  { %855 = vmatmul.mubr.msk.f32.gmra.mrb[6].mxu0 %vm64_vm0, %v733_v15 }
  0x1d   :  { %857 = vmatprep.mubr.msk.f32.mxu0 %vm64_vm0, %v734_v16 }
  0x20   :  { %858 = vmatmul.mubr.msk.f32.gmra.mrb[8].mxu0 %vm64_vm0, %v735_v17 }
  0x21   :  { %860 = vmatprep.mubr.msk.f32.mxu0 %vm64_vm0, %v736_v18 }
  0x24   :  { %861 = vmatmul.mubr.msk.f32.gmra.mrb[10].mxu0 %vm64_vm0, %v737_v19 }
  0x25   :  { %863 = vmatprep.mubr.msk.f32.mxu0 %vm64_vm0, %v738_v20 }
  0x28   :  { %864 = vmatmul.mubr.msk.f32.gmra.mrb[12].mxu0 %vm64_vm0, %v739_v21 }
  0x29   :  { %866 = vmatprep.mubr.msk.f32.mxu0 %vm64_vm0, %v740_v22 }
  0x2c   :  { %867 = vmatmul.mubr.msk.f32.gmra.mrb[14].mxu0 %vm64_vm0, %v741_v23 }
  0xe3   :  { %v847_v24 = vpop.f32.mrb[0].mxu0 }
  0xe4   :  { %260 = vst.msk [vmem:[%s1216_s1 + $0x8] sm:$0xff] %vm258_vm7, %v847_v24  ;;  %v179_v25 = vpop.f32.mrb[1].mxu0 }
  0xe5   :  { %259 = vst.msk [vmem:[%s1216_s1] sm:$0xff] %vm258_vm7, %v179_v25 }
  0xe7   :  { %v850_v26 = vpop.f32.mrb[2].mxu0 }
  0xe8   :  { %262 = vst.msk [vmem:[%s1216_s1 + $0x18] sm:$0xff] %vm258_vm7, %v850_v26  ;;  %v189_v27 = vpop.f32.mrb[3].mxu0 }
  0xe9   :  { %261 = vst.msk [vmem:[%s1216_s1 + $0x10] sm:$0xff] %vm258_vm7, %v189_v27 }
  0xeb   :  { %v853_v28 = vpop.f32.mrb[4].mxu0 }
  0xec   :  { %264 = vst.msk [vmem:[%s1216_s1 + $0x28] sm:$0xff] %vm258_vm7, %v853_v28  ;;  %v199_v29 = vpop.f32.mrb[5].mxu0  ;;  %v275_v30 = vld [vmem:[%s1216_s1] ss:$2 sm:$0xff] }
  0xed   :  { %263 = vst.msk [vmem:[%s1216_s1 + $0x20] sm:$0xff] %vm258_vm7, %v199_v29  ;;  %873 = vmatprep.mubr.msk.f32.mxu1 %vm258_vm7, %v275_v30 }
  0xef   :  { %v856_v31 = vpop.f32.mrb[6].mxu0 }
  0xf0   :  { %266 = vst.msk [vmem:[%s1216_s1 + $0x38] sm:$0xff] %vm258_vm7, %v856_v31  ;;  %v209_v32 = vpop.f32.mrb[7].mxu0  ;;  %v766_v33 = vld [vmem:[%s1216_s1 + $0x10] ss:$2 sm:$0xff] }
  0xf1   :  { %265 = vst.msk [vmem:[%s1216_s1 + $0x30] sm:$0xff] %vm258_vm7, %v209_v32  ;;  %874 = vmatmul.mubr.msk.f32.vlgmr.msra.gmra.mrb[0].mxu1 %vm258_vm7, %v766_v33 }
  0xf2   :  { %886 = vmatpush3.msk.msra.mxu1 %vm52_vm1, %v920_v48 }
  0xf3   :  { %v859_v34 = vpop.f32.mrb[8].mxu0  ;;  %893 = vmatprep.subr.msk.mxu1 %vm546_vm9, %v742_v62 }
  0xf4   :  { %268 = vst.msk [vmem:[%s1216_s1 + $0x48] sm:$0xff] %vm258_vm7, %v859_v34  ;;  %v219_v35 = vpop.f32.mrb[9].mxu0  ;;  %v767_v36 = vld [vmem:[%s1216_s1 + $0x20] ss:$2 sm:$0xff] }
  0xf5   :  { %267 = vst.msk [vmem:[%s1216_s1 + $0x40] sm:$0xff] %vm258_vm7, %v219_v35  ;;  %876 = vmatprep.mubr.msk.f32.mxu1 %vm258_vm7, %v767_v36 }
  0xf7   :  { %v862_v37 = vpop.f32.mrb[10].mxu0 }
  0xf8   :  { %270 = vst.msk [vmem:[%s1216_s1 + $0x58] sm:$0xff] %vm258_vm7, %v862_v37  ;;  %v229_v38 = vpop.f32.mrb[11].mxu0  ;;  %v768_v39 = vld [vmem:[%s1216_s1 + $0x30] ss:$2 sm:$0xff] }
  0xf9   :  { %269 = vst.msk [vmem:[%s1216_s1 + $0x50] sm:$0xff] %vm258_vm7, %v229_v38  ;;  %877 = vmatmul.mubr.msk.f32.gmra.mrb[2].mxu1 %vm258_vm7, %v768_v39 }
  0xfb   :  { %v865_v40 = vpop.f32.mrb[12].mxu0 }
  0xfc   :  { %272 = vst.msk [vmem:[%s1216_s1 + $0x68] sm:$0xff] %vm258_vm7, %v865_v40  ;;  %v239_v41 = vpop.f32.mrb[13].mxu0  ;;  %v769_v42 = vld [vmem:[%s1216_s1 + $0x40] ss:$2 sm:$0xff] }
  0xfd   :  { %271 = vst.msk [vmem:[%s1216_s1 + $0x60] sm:$0xff] %vm258_vm7, %v239_v41  ;;  %879 = vmatprep.mubr.msk.f32.mxu1 %vm258_vm7, %v769_v42 }
  0xff   :  { %v868_v43 = vpop.f32.mrb[14].mxu0 }
 0x100   :  { %274 = vst.msk [vmem:[%s1216_s1 + $0x78] sm:$0xff] %vm258_vm7, %v868_v43  ;;  %v249_v44 = vpop.f32.mrb[15].mxu0  ;;  %v770_v45 = vld [vmem:[%s1216_s1 + $0x50] ss:$2 sm:$0xff] }
 0x101   :  { %273 = vst.msk [vmem:[%s1216_s1 + $0x70] sm:$0xff] %vm258_vm7, %v249_v44  ;;  %880 = vmatmul.mubr.msk.f32.gmra.mrb[4].mxu1 %vm258_vm7, %v770_v45 }
 0x104   :  { %v771_v46 = vld [vmem:[%s1216_s1 + $0x60] ss:$2 sm:$0xff] }
 0x105   :  { %882 = vmatprep.mubr.msk.f32.mxu1 %vm258_vm7, %v771_v46 }
 0x108   :  { %v772_v47 = vld [vmem:[%s1216_s1 + $0x70] ss:$2 sm:$0xff] }
 0x109   :  { %883 = vmatmul.mubr.msk.f32.gmra.mrb[6].mxu1 %vm258_vm7, %v772_v47 }
 0x1c4   :  { %v875_v49 = vpop.f32.mrb[0].mxu1 }
 0x1c5   :  { %421 = vst.msk [vmem:[%s1217_s2 + $0x8] sm:$0xff] %vm419_vm8, %v875_v49  ;;  %v380_v50 = vpop.f32.mrb[1].mxu1 }
 0x1c6   :  { %420 = vst.msk [vmem:[%s1217_s2] sm:$0xff] %vm419_vm8, %v380_v50 }
 0x1cc   :  { %v878_v51 = vpop.f32.mrb[2].mxu1 }
 0x1cd   :  { %423 = vst.msk [vmem:[%s1217_s2 + $0x18] sm:$0xff] %vm419_vm8, %v878_v51  ;;  %v390_v52 = vpop.f32.mrb[3].mxu1  ;;  %v428_v53 = vld [vmem:[%s1217_s2] ss:$2 sm:$0xff] }
 0x1ce   :  { %422 = vst.msk [vmem:[%s1217_s2 + $0x10] sm:$0xff] %vm419_vm8, %v390_v52  ;;  %887 = vmatprep.mubr.msk.f32.mxu1 %vm419_vm8, %v428_v53 }
 0x1d4   :  { %v881_v54 = vpop.f32.mrb[4].mxu1 }
 0x1d5   :  { %425 = vst.msk [vmem:[%s1217_s2 + $0x28] sm:$0xff] %vm419_vm8, %v881_v54  ;;  %v400_v55 = vpop.f32.mrb[5].mxu1  ;;  %v783_v56 = vld [vmem:[%s1217_s2 + $0x10] ss:$2 sm:$0xff] }
 0x1d6   :  { %424 = vst.msk [vmem:[%s1217_s2 + $0x20] sm:$0xff] %vm419_vm8, %v400_v55  ;;  %888 = vmatmul.mubr.msk.f32.vlgmr.msra.gmra.mrb[8].mxu1 %vm419_vm8, %v783_v56 }
 0x1d7   :  { %894 = vmatpush3.msk.msra.mxu1 %vm546_vm9, %v742_v62 }
 0x1d8   :  { %898 = vmatprep.subr.mxu1 %v921_v61 }
 0x1dc   :  { %v884_v57 = vpop.f32.mrb[6].mxu1 }
 0x1dd   :  { %427 = vst.msk [vmem:[%s1217_s2 + $0x38] sm:$0xff] %vm419_vm8, %v884_v57  ;;  %v410_v58 = vpop.f32.mrb[7].mxu1  ;;  %v784_v59 = vld [vmem:[%s1217_s2 + $0x20] ss:$2 sm:$0xff] }
 0x1de   :  { %426 = vst.msk [vmem:[%s1217_s2 + $0x30] sm:$0xff] %vm419_vm8, %v410_v58  ;;  %890 = vmatprep.mubr.msk.f32.mxu1 %vm419_vm8, %v784_v59 }
 0x1e5   :  { %v785_v60 = vld [vmem:[%s1217_s2 + $0x30] ss:$2 sm:$0xff] }
 0x1e6   :  { %891 = vmatmul.mubr.msk.f32.gmra.mrb[10].mxu1 %vm419_vm8, %v785_v60 }
 0x2a9   :  { %v889_v63 = vpop.f32.mrb[8].mxu1 }
 0x2aa   :  { %534 = vst.msk [vmem:[%s1218_s3 + $0x8] sm:$0xff] %vm532_vm10, %v889_v63  ;;  %v513_v0 = vpop.f32.mrb[9].mxu1 }
 0x2ab   :  { %533 = vst.msk [vmem:[%s1218_s3] sm:$0xff] %vm532_vm10, %v513_v0 }
 0x2b2   :  { %v537_v1 = vld [vmem:[%s1218_s3] ss:$2 sm:$0xff] }
 0x2b3   :  { %895 = vmatprep.mubr.msk.f32.mxu1 %vm532_vm10, %v537_v1 }
 0x2b9   :  { %v892_v2 = vpop.f32.mrb[10].mxu1 }
 0x2ba   :  { %536 = vst.msk [vmem:[%s1218_s3 + $0x18] sm:$0xff] %vm532_vm10, %v892_v2  ;;  %v523_v3 = vpop.f32.mrb[11].mxu1 }
 0x2bb   :  { %535 = vst.msk [vmem:[%s1218_s3 + $0x10] sm:$0xff] %vm532_vm10, %v523_v3 }
 0x2c2   :  { %v791_v4 = vld [vmem:[%s1218_s3 + $0x10] ss:$2 sm:$0xff] }
 0x2c3   :  { %896 = vmatmul.mubr.msk.f32.vlgmr.msra.gmra.mrb[12].mxu1 %vm532_vm10, %v791_v4 }
 0x2c4   :  { %899 = vmatpush3.msk.msra.mxu1 %vm632_vm11, %v742_v62  ;;  %900 = vmatprep.mubr.msk.f32.mxu1 %vm922_vm12, %v921_v61 }
 0x396   :  { %v897_v5 = vpop.f32.mrb[12].mxu1 }
 0x397   :  { %627 = vst.msk [vmem:[%s1219_s4 + $0x8] sm:$0xff] %vm625_vm13, %v897_v5  ;;  %v616_v6 = vpop.f32.mrb[13].mxu1 }
 0x398   :  { %626 = vst.msk [vmem:[%s1219_s4] sm:$0xff] %vm625_vm13, %v616_v6 }
 0x39f   :  { %v628_v7 = vld [vmem:[%s1219_s4] ss:$2 sm:$0xff] }
 0x3a0   :  { %901 = vmatmul.mubr.msk.f32.vlgmr.msra.gmra.mrb[14].mxu1 %vm625_vm13, %v628_v7 }
 0x473   :  { %v701_v8 = vpop.f32.mrb[14].mxu1 }
 0x474   :  { %706 = vst.msk [vmem:[%s1220_s5] sm:$0xff] %vm705_vm14, %v701_v8  ;;  %v902_v9 = vpop.f32.mrb[15].mxu1 }

</bundles_post_ra>
